<compile_context>
chip_gen: v6e
topology: v6e:2x2x1
jax: 0.10.0
libtpu: 0.0.40
codegen_flags: <defaults>
</compile_context>

<pallas_src>
import jax
import jax.numpy as jnp
from jax.experimental import pallas as pl
from jax.experimental.pallas import tpu as pltpu

LANE = 128


def _round_up(x, m):
    return ((x + m - 1) // m) * m


def _vmem_capacity_bytes():
    """Physical VMEM of the local chip (fallback: v7x-safe 64 MiB)."""
    try:
        return int(pltpu.get_tpu_info().vmem_capacity_bytes)
    except Exception:
        return 64 * 1024 * 1024


def _choose_tiles(n, tm_cap, tk_cap):
    """Pick (n_pad, tm, tk): 128-aligned tiles that both divide n_pad.

    Small graphs (n128 <= tk_cap): a single reduction tile, zero extra padding.
    Large graphs: pad n up to a multiple of tm_cap (bounded waste), tm = tm_cap,
    tk grows by doubling while it still divides n_pad and fits the cap.
    """
    n128 = _round_up(max(n, 1), LANE)
    if n128 <= tk_cap:
        tk = n128
        tm = min(tm_cap, n128)
        while n128 % tm:
            tm -= LANE
        return n128, tm, tk
    n_pad = _round_up(n128, tm_cap)
    tm = tm_cap
    tk = tm_cap
    while tk * 2 <= tk_cap and n_pad % (tk * 2) == 0:
        tk *= 2
    return n_pad, tm, tk


# ----------------------------------------------------------------------------
# Fused multi-layer GCN kernel
# ----------------------------------------------------------------------------
def _make_gcn_stack_kernel(tm, tk, p_dtype):
    def kernel(x_hbm, a_ref, w_ref, b_ref, o_hbm, h_ref, p_ref, acc_ref, dma_sem):
        l = pl.program_id(0)   # layer
        i = pl.program_id(1)   # output row tile
        k = pl.program_id(2)   # reduction (column) tile
        nl = pl.num_programs(0)
        nk = pl.num_programs(2)

        def project(block):
            kb = pl.multiple_of(block * tk, tk)
            p_ref[pl.ds(kb, tk), :] = jnp.dot(
                h_ref[pl.ds(kb, tk), :], w_ref[0],
                preferred_element_type=jnp.float32).astype(p_dtype)

        # One-time: stage padded input features HBM -> resident H scratch.
        # x is a raw pl.ANY ref, so no per-step BlockSpec DMA and no extra
        # resident VMEM input block.
        @pl.when((l == 0) & (i == 0) & (k == 0))
        def _():
            cp = pltpu.make_async_copy(x_hbm, h_ref, dma_sem)
            cp.start()
            cp.wait()

        # Hoisted + software-pipelined projection P = H @ W_l: computed once
        # per (layer, k-block) during the first row sweep (i == 0).  At step k
        # we produce block k+1 (block 0 primed at k == 0) so the H@W matmul is
        # never a same-step RAW dependency feeding the A@P matmul below.
        @pl.when(i == 0)
        def _():
            @pl.when(k == 0)
            def _():
                project(0)

            @pl.when(k + 1 < nk)
            def _():
                project(k + 1)

        @pl.when(k == 0)
        def _():
            acc_ref[...] = jnp.zeros_like(acc_ref)

        kb = pl.multiple_of(k * tk, tk)
        # bf16 x bf16 -> f32 accumulate (bf16-native MXU on v6e/v7x).
        acc_ref[...] += jnp.dot(a_ref[...], p_ref[pl.ds(kb, tk), :],
                                preferred_element_type=jnp.float32)

        @pl.when(k == nk - 1)
        def _():
            ib = pl.multiple_of(i * tm, tm)
            # bias added post-aggregation; result feeds the next layer
            h_ref[pl.ds(ib, tm), :] = acc_ref[...] + b_ref[0]

            # Only the LAST layer ever leaves VMEM: one DMA per row tile
            # instead of a per-layer HBM writeback of every output block.
            @pl.when(l == nl - 1)
            def _():
                cp = pltpu.make_async_copy(h_ref.at[pl.ds(ib, tm), :],
                                           o_hbm.at[pl.ds(ib, tm), :],
                                           dma_sem)
                cp.start()
                cp.wait()

    return kernel


def gcnii_pallas(x, a_hat, ws, bs, *, a_dtype=jnp.bfloat16):
    """Run the full GCNConv stack in a single fused pallas_call."""
    n, c_in = x.shape
    c_out = ws[-1].shape[1]
    num_layers = len(ws)

    c_pad = _round_up(max(c_in, c_out, LANE), LANE)

    vmem_cap = _vmem_capacity_bytes()
    # v5e/v6e (128 MiB physical) can afford larger reduction tiles than v7x.
    tk_cap = 2048 if vmem_cap >= 96 * 1024 * 1024 else 1024
    n_pad, tm, tk = _choose_tiles(n, 512, tk_cap)

    # Zero-pad features / adjacency / params to lane-aligned shapes.
    x_p = jnp.zeros((n_pad, c_pad), jnp.float32).at[:n, :c_in].set(x)
    # A_hat is the O(N^2) operand: store/stream it (and P) in bf16; the matmul
    # still accumulates in f32 via preferred_element_type.
    a_p = jnp.zeros((n_pad, n_pad), a_dtype).at[:n, :n].set(a_hat.astype(a_dtype))
    w_stack = jnp.zeros((num_layers, c_pad, c_pad), jnp.float32)
    b_stack = jnp.zeros((num_layers, 1, c_pad), jnp.float32)
    for l, (w, b) in enumerate(zip(ws, bs)):
        w_stack = w_stack.at[l, : w.shape[0], : w.shape[1]].set(w)
        b_stack = b_stack.at[l, 0, : b.shape[0]].set(b)

    grid = (num_layers, n_pad // tm, n_pad // tk)

    out = pl.pallas_call(
        _make_gcn_stack_kernel(tm, tk, a_dtype),
        out_shape=jax.ShapeDtypeStruct((n_pad, c_pad), jnp.float32),
        grid_spec=pltpu.PrefetchScalarGridSpec(
            num_scalar_prefetch=0,
            grid=grid,
            in_specs=[
                # input features: raw ref, staged into H scratch exactly once
                pl.BlockSpec(memory_space=pl.ANY),
                # A_hat streamed as (tm, tk) bf16 tiles
                pl.BlockSpec((tm, tk), lambda l, i, k: (i, k)),
                # per-layer weight / bias
                pl.BlockSpec((1, c_pad, c_pad), lambda l, i, k: (l, 0, 0)),
                pl.BlockSpec((1, 1, c_pad), lambda l, i, k: (l, 0, 0)),
            ],
            # output written only via manual DMA on the last layer
            out_specs=pl.BlockSpec(memory_space=pl.ANY),
            scratch_shapes=[
                pltpu.VMEM((n_pad, c_pad), jnp.float32),   # resident features H
                pltpu.VMEM((n_pad, c_pad), a_dtype),       # per-layer projection P
                pltpu.VMEM((tm, c_pad), jnp.float32),      # row-tile accumulator
                pltpu.SemaphoreType.DMA,                   # staging / writeback DMA sem
            ],
        ),
        compiler_params=pltpu.CompilerParams(
            # l and k are sequential recursions/reductions; i carries a
            # dependency through the shared H/P scratch and the last-layer DMA,
            # so it must also stay "arbitrary" in this fused formulation.
            dimension_semantics=("arbitrary", "arbitrary", "arbitrary"),
            vmem_limit_bytes=int(vmem_cap * 0.8),          # generation-aware
        ),
    )(x_p, a_p, w_stack, b_stack)

    return out[:n, :c_out]


# ----------------------------------------------------------------------------
# Glue: dense normalized adjacency (gcn_norm with remaining self loops)
# ----------------------------------------------------------------------------
def build_a_hat(edge_index, num_nodes):
    src = edge_index[0]
    dst = edge_index[1]
    not_loop = (src != dst).astype(jnp.float32)
    adj = jnp.zeros((num_nodes, num_nodes), dtype=jnp.float32)
    adj = adj.at[dst, src].add(not_loop)       # scatter-add, self loops excluded
    idx = jnp.arange(num_nodes)
    adj = adj.at[idx, idx].set(1.0)            # exactly one self loop per node
    deg = jnp.sum(adj, axis=1)
    d_inv_sqrt = jnp.where(deg > 0, jax.lax.rsqrt(deg), 0.0)
    return d_inv_sqrt[:, None] * adj * d_inv_sqrt[None, :]


# ----------------------------------------------------------------------------
# Parameter init (glorot weights, zero bias) + forward
# ----------------------------------------------------------------------------
def init_gcnii_params(key, in_channels, out_channels, num_layers):
    params = []
    dims = [(in_channels, out_channels)] + [
        (out_channels, out_channels) for _ in range(num_layers - 1)
    ]
    for cin, cout in dims:
        key, wk = jax.random.split(key)
        limit = jnp.sqrt(6.0 / (cin + cout))   # glorot uniform
        w = jax.random.uniform(wk, (cin, cout), jnp.float32, -limit, limit)
        b = jnp.zeros((cout,), jnp.float32)
        params.append((w, b))
    return params


@jax.jit
def gcnii_forward(x, edge_index, params):
    a_hat = build_a_hat(edge_index, x.shape[0])
    ws = tuple(w for (w, _) in params)
    bs = tuple(b for (_, b) in params)
    return gcnii_pallas(x, a_hat, ws, bs)


# ----------------------------------------------------------------------------
# Pure-JAX reference (f32)
# ----------------------------------------------------------------------------
def gcnii_reference(x, edge_index, params):
    a_hat = build_a_hat(edge_index, x.shape[0])
    h = x
    for (w, b) in params:
        h = a_hat @ (h @ w) + b
    return h


if __name__ == "__main__":
    num_nodes = 16
    in_channels = 8
    out_channels = 32
    num_layers = 3

    key = jax.random.PRNGKey(0)
    key, xk = jax.random.split(key)
    x = jax.random.normal(xk, (num_nodes, in_channels), jnp.float32)

    # deterministic small graph: bidirectional ring
    idx = jnp.arange(num_nodes, dtype=jnp.int32)
    src = jnp.concatenate([idx, (idx + 1) % num_nodes])
    dst = jnp.concatenate([(idx + 1) % num_nodes, idx])
    edge_index = jnp.stack([src, dst], axis=0)  # [2, 2*N]

    params = tuple(init_gcnii_params(key, in_channels, out_channels, num_layers))

    out = gcnii_forward(x, edge_index, params)
    out = jax.block_until_ready(out)

    ref = gcnii_reference(x, edge_index, params)
    assert out.shape == (num_nodes, out_channels)
    # bf16 A_hat / P with f32 accumulation vs pure-f32 reference.
    assert jnp.allclose(out, ref, atol=3e-2, rtol=3e-2)

    print("KERNEL_OK")
</pallas_src>

<mosaic_0001>
module attributes {stable_mosaic.version = 11 : i64} {
  func.func private @main(%arg0: i32) attributes {dimension_semantics = [#tpu.dimension_semantics<core_parallel>], iteration_bounds = array<i64: 2>, tpu.core_type = #tpu.core_type<sc_scalar_subcore>, window_params = []} {
    return
  }
}

module attributes {stable_mosaic.version = 11 : i64} {
  func.func private @main(%arg0: i32) attributes {dimension_semantics = [#tpu.dimension_semantics<core_parallel>], iteration_bounds = array<i64: 2>, tpu.core_type = #tpu.core_type<sc_scalar_subcore>, window_params = []} {
    return
  }
}

module attributes {stable_mosaic.version = 11 : i64} {
  func.func @kernel(%arg0: i32, %arg1: i32, %arg2: i32, %arg3: memref<128x128xf32, #tpu.memory_space<any>>, %arg4: memref<128x128xbf16, #tpu.memory_space<vmem>>, %arg5: memref<1x128x128xf32, #tpu.memory_space<vmem>>, %arg6: memref<1x1x128xf32, #tpu.memory_space<vmem>>, %arg7: memref<128x128xf32, #tpu.memory_space<any>>, %arg8: memref<128x128xf32, #tpu.memory_space<vmem>>, %arg9: memref<128x128xbf16, #tpu.memory_space<vmem>>, %arg10: memref<128x128xf32, #tpu.memory_space<vmem>>, %arg11: memref<!tpu.dma_semaphore, #tpu.memory_space<semaphore_mem>>) attributes {dimension_semantics = [#tpu.dimension_semantics<arbitrary>, #tpu.dimension_semantics<arbitrary>, #tpu.dimension_semantics<arbitrary>], iteration_bounds = array<i64: 3, 1, 1>, scalar_prefetch = 0 : i64, scratch_operands = 4 : i64, tpu.core_type = #tpu.core_type<tc>, window_params = [{}, {transform_indices = @transform_1, window_bounds = array<i64: 128, 128>}, {transform_indices = @transform_2, window_bounds = array<i64: 1, 128, 128>}, {transform_indices = @transform_3, window_bounds = array<i64: 1, 1, 128>}, {}]} {
    %c0_i32 = arith.constant 0 : i32
    %0 = arith.cmpi eq, %arg0, %c0_i32 : i32
    %c0_i32_0 = arith.constant 0 : i32
    %1 = arith.cmpi eq, %arg1, %c0_i32_0 : i32
    %2 = arith.andi %0, %1 : i1
    %c0_i32_1 = arith.constant 0 : i32
    %3 = arith.cmpi eq, %arg2, %c0_i32_1 : i32
    %4 = arith.andi %2, %3 : i1
    %5 = arith.extui %4 : i1 to i32
    %c0_i32_2 = arith.constant 0 : i32
    %6 = arith.cmpi ne, %5, %c0_i32_2 : i32
    scf.if %6 {
      tpu.enqueue_dma source(%arg3 : memref<128x128xf32, #tpu.memory_space<any>>) target(%arg8 : memref<128x128xf32, #tpu.memory_space<vmem>>) target_semaphore(%arg11 : memref<!tpu.dma_semaphore, #tpu.memory_space<semaphore_mem>>)
      tpu.wait_dma2 semaphore(%arg11 : memref<!tpu.dma_semaphore, #tpu.memory_space<semaphore_mem>>) src(%arg3 : memref<128x128xf32, #tpu.memory_space<any>>) dst(%arg8 : memref<128x128xf32, #tpu.memory_space<vmem>>)
    } else {
    }
    %c0_i32_3 = arith.constant 0 : i32
    %7 = arith.cmpi eq, %arg1, %c0_i32_3 : i32
    %8 = arith.extui %7 : i1 to i32
    %c0_i32_4 = arith.constant 0 : i32
    %9 = arith.cmpi ne, %8, %c0_i32_4 : i32
    scf.if %9 {
      %c0_i32_15 = arith.constant 0 : i32
      %25 = arith.cmpi eq, %arg2, %c0_i32_15 : i32
      %26 = arith.extui %25 : i1 to i32
      %c0_i32_16 = arith.constant 0 : i32
      %27 = arith.cmpi ne, %26, %c0_i32_16 : i32
      scf.if %27 {
        %c0_i32_19 = arith.constant 0 : i32
        %32 = tpu.assume_multiple %c0_i32_19, 128 : i32
        %33 = arith.index_cast %32 : i32 to index
        %c0_20 = arith.constant 0 : index
        %34 = vector.load %arg8[%33, %c0_20] : memref<128x128xf32, #tpu.memory_space<vmem>>, vector<128x128xf32>
        %c0_21 = arith.constant 0 : index
        %c0_22 = arith.constant 0 : index
        %c0_23 = arith.constant 0 : index
        %35 = vector.load %arg5[%c0_21, %c0_22, %c0_23] : memref<1x128x128xf32, #tpu.memory_space<vmem>>, vector<1x128x128xf32>
        %36 = vector.shape_cast %35 : vector<1x128x128xf32> to vector<128x128xf32>
        %cst_24 = arith.constant dense<0.000000e+00> : vector<128x128xf32>
        %37 = tpu.matmul %34, %36, %cst_24 {dimension_numbers = #tpu.dot_dimension_numbers<[1], [0], [0], [1], [0, 0, 1, 1], [], []>} : vector<128x128xf32>, vector<128x128xf32>, vector<128x128xf32> -> vector<128x128xf32>
        %38 = arith.truncf %37 : vector<128x128xf32> to vector<128x128xbf16>
        %39 = arith.index_cast %32 : i32 to index
        %c0_25 = arith.constant 0 : index
        %40 = vector.load %arg9[%39, %c0_25] : memref<128x128xbf16, #tpu.memory_space<vmem>>, vector<128x128xbf16>
        tpu.vector_store %arg9[%39, %c0_25], %38 {strides = array<i32>} : memref<128x128xbf16, #tpu.memory_space<vmem>>, vector<128x128xbf16>,
      } else {
      }
      %c1_i32 = arith.constant 1 : i32
      %28 = arith.addi %arg2, %c1_i32 : i32
      %c1_i32_17 = arith.constant 1 : i32
      %29 = arith.cmpi slt, %28, %c1_i32_17 : i32
      %30 = arith.extui %29 : i1 to i32
      %c0_i32_18 = arith.constant 0 : i32
      %31 = arith.cmpi ne, %30, %c0_i32_18 : i32
      scf.if %31 {
        %c1_i32_19 = arith.constant 1 : i32
        %32 = arith.addi %arg2, %c1_i32_19 : i32
        %c128_i32_20 = arith.constant 128 : i32
        %33 = arith.muli %32, %c128_i32_20 : i32
        %34 = tpu.assume_multiple %33, 128 : i32
        %35 = arith.index_cast %34 : i32 to index
        %c0_21 = arith.constant 0 : index
        %36 = vector.load %arg8[%35, %c0_21] : memref<128x128xf32, #tpu.memory_space<vmem>>, vector<128x128xf32>
        %c0_22 = arith.constant 0 : index
        %c0_23 = arith.constant 0 : index
        %c0_24 = arith.constant 0 : index
        %37 = vector.load %arg5[%c0_22, %c0_23, %c0_24] : memref<1x128x128xf32, #tpu.memory_space<vmem>>, vector<1x128x128xf32>
        %38 = vector.shape_cast %37 : vector<1x128x128xf32> to vector<128x128xf32>
        %cst_25 = arith.constant dense<0.000000e+00> : vector<128x128xf32>
        %39 = tpu.matmul %36, %38, %cst_25 {dimension_numbers = #tpu.dot_dimension_numbers<[1], [0], [0], [1], [0, 0, 1, 1], [], []>} : vector<128x128xf32>, vector<128x128xf32>, vector<128x128xf32> -> vector<128x128xf32>
        %40 = arith.truncf %39 : vector<128x128xf32> to vector<128x128xbf16>
        %41 = arith.index_cast %34 : i32 to index
        %c0_26 = arith.constant 0 : index
        %42 = vector.load %arg9[%41, %c0_26] : memref<128x128xbf16, #tpu.memory_space<vmem>>, vector<128x128xbf16>
        tpu.vector_store %arg9[%41, %c0_26], %40 {strides = array<i32>} : memref<128x128xbf16, #tpu.memory_space<vmem>>, vector<128x128xbf16>,
      } else {
      }
    } else {
    }
    %c0_i32_5 = arith.constant 0 : i32
    %10 = arith.cmpi eq, %arg2, %c0_i32_5 : i32
    %11 = arith.extui %10 : i1 to i32
    %c0_i32_6 = arith.constant 0 : i32
    %12 = arith.cmpi ne, %11, %c0_i32_6 : i32
    scf.if %12 {
      %cst_15 = arith.constant 0.000000e+00 : f32
      %25 = vector.broadcast %cst_15 : f32 to vector<128x128xf32>
      %c0_16 = arith.constant 0 : index
      %c0_17 = arith.constant 0 : index
      %26 = vector.load %arg10[%c0_16, %c0_17] : memref<128x128xf32, #tpu.memory_space<vmem>>, vector<128x128xf32>
      tpu.vector_store %arg10[%c0_16, %c0_17], %25 {strides = array<i32>} : memref<128x128xf32, #tpu.memory_space<vmem>>, vector<128x128xf32>,
    } else {
    }
    %c128_i32 = arith.constant 128 : i32
    %13 = arith.muli %arg2, %c128_i32 : i32
    %14 = tpu.assume_multiple %13, 128 : i32
    %c0 = arith.constant 0 : index
    %c0_7 = arith.constant 0 : index
    %15 = vector.load %arg10[%c0, %c0_7] : memref<128x128xf32, #tpu.memory_space<vmem>>, vector<128x128xf32>
    %c0_8 = arith.constant 0 : index
    %c0_9 = arith.constant 0 : index
    %16 = vector.load %arg4[%c0_8, %c0_9] : memref<128x128xbf16, #tpu.memory_space<vmem>>, vector<128x128xbf16>
    %17 = arith.index_cast %14 : i32 to index
    %c0_10 = arith.constant 0 : index
    %18 = vector.load %arg9[%17, %c0_10] : memref<128x128xbf16, #tpu.memory_space<vmem>>, vector<128x128xbf16>
    %cst = arith.constant dense<0.000000e+00> : vector<128x128xf32>
    %19 = tpu.matmul %16, %18, %cst {dimension_numbers = #tpu.dot_dimension_numbers<[1], [0], [0], [1], [0, 0, 1, 1], [], []>} : vector<128x128xbf16>, vector<128x128xbf16>, vector<128x128xf32> -> vector<128x128xf32>
    %20 = arith.addf %15, %19 : vector<128x128xf32>
    %c0_11 = arith.constant 0 : index
    %c0_12 = arith.constant 0 : index
    %21 = vector.load %arg10[%c0_11, %c0_12] : memref<128x128xf32, #tpu.memory_space<vmem>>, vector<128x128xf32>
    tpu.vector_store %arg10[%c0_11, %c0_12], %20 {strides = array<i32>} : memref<128x128xf32, #tpu.memory_space<vmem>>, vector<128x128xf32>,
    %c0_i32_13 = arith.constant 0 : i32
    %22 = arith.cmpi eq, %arg2, %c0_i32_13 : i32
    %23 = arith.extui %22 : i1 to i32
    %c0_i32_14 = arith.constant 0 : i32
    %24 = arith.cmpi ne, %23, %c0_i32_14 : i32
    scf.if %24 {
      %c128_i32_15 = arith.constant 128 : i32
      %25 = arith.muli %arg1, %c128_i32_15 : i32
      %26 = tpu.assume_multiple %25, 128 : i32
      %c0_16 = arith.constant 0 : index
      %c0_17 = arith.constant 0 : index
      %27 = vector.load %arg10[%c0_16, %c0_17] : memref<128x128xf32, #tpu.memory_space<vmem>>, vector<128x128xf32>
      %c0_18 = arith.constant 0 : index
      %c0_19 = arith.constant 0 : index
      %c0_20 = arith.constant 0 : index
      %28 = vector.load %arg6[%c0_18, %c0_19, %c0_20] : memref<1x1x128xf32, #tpu.memory_space<vmem>>, vector<1x1x128xf32>
      %29 = vector.shape_cast %28 : vector<1x1x128xf32> to vector<1x128xf32>
      %30 = vector.broadcast %29 : vector<1x128xf32> to vector<128x128xf32>
      %31 = arith.addf %27, %30 : vector<128x128xf32>
      %32 = arith.index_cast %26 : i32 to index
      %c0_21 = arith.constant 0 : index
      %33 = vector.load %arg8[%32, %c0_21] : memref<128x128xf32, #tpu.memory_space<vmem>>, vector<128x128xf32>
      tpu.vector_store %arg8[%32, %c0_21], %31 {strides = array<i32>} : memref<128x128xf32, #tpu.memory_space<vmem>>, vector<128x128xf32>,
      %c2_i32 = arith.constant 2 : i32
      %34 = arith.cmpi eq, %arg0, %c2_i32 : i32
      %35 = arith.extui %34 : i1 to i32
      %c0_i32_22 = arith.constant 0 : i32
      %36 = arith.cmpi ne, %35, %c0_i32_22 : i32
      scf.if %36 {
        %c0_i32_23 = arith.constant 0 : i32
        %37 = tpu.memref_slice %arg8[%26, %c0_i32_23] : memref<128x128xf32, #tpu.memory_space<vmem>> -> memref<128x128xf32, #tpu.memory_space<vmem>>
        %c0_i32_24 = arith.constant 0 : i32
        %38 = tpu.memref_slice %arg7[%26, %c0_i32_24] : memref<128x128xf32, #tpu.memory_space<any>> -> memref<128x128xf32, #tpu.memory_space<any>>
        tpu.enqueue_dma source(%37 : memref<128x128xf32, #tpu.memory_space<vmem>>) target(%38 : memref<128x128xf32, #tpu.memory_space<any>>) target_semaphore(%arg11 : memref<!tpu.dma_semaphore, #tpu.memory_space<semaphore_mem>>)
        %c0_i32_25 = arith.constant 0 : i32
        %39 = tpu.memref_slice %arg8[%26, %c0_i32_25] : memref<128x128xf32, #tpu.memory_space<vmem>> -> memref<128x128xf32, #tpu.memory_space<vmem>>
        %c0_i32_26 = arith.constant 0 : i32
        %40 = tpu.memref_slice %arg7[%26, %c0_i32_26] : memref<128x128xf32, #tpu.memory_space<any>> -> memref<128x128xf32, #tpu.memory_space<any>>
        tpu.wait_dma2 semaphore(%arg11 : memref<!tpu.dma_semaphore, #tpu.memory_space<semaphore_mem>>) src(%39 : memref<128x128xf32, #tpu.memory_space<vmem>>) dst(%40 : memref<128x128xf32, #tpu.memory_space<any>>)
      } else {
      }
    } else {
    }
    return
  }
  func.func @transform_1(%arg0: i32, %arg1: i32, %arg2: i32) -> (i32, i32) {
    %c0_i32 = arith.constant 0 : i32
    return %arg1, %arg2 : i32, i32
  }
  func.func @transform_2(%arg0: i32, %arg1: i32, %arg2: i32) -> (i32, i32, i32) {
    %c0_i32 = arith.constant 0 : i32
    %c0_i32_0 = arith.constant 0 : i32
    %c0_i32_1 = arith.constant 0 : i32
    return %arg0, %c0_i32, %c0_i32_0 : i32, i32, i32
  }
  func.func @transform_3(%arg0: i32, %arg1: i32, %arg2: i32) -> (i32, i32, i32) {
    %c0_i32 = arith.constant 0 : i32
    %c0_i32_0 = arith.constant 0 : i32
    %c0_i32_1 = arith.constant 0 : i32
    return %arg0, %c0_i32, %c0_i32_0 : i32, i32, i32
  }
}

</mosaic_0001>

<bundles_post_ra>
// kernel: gcnii_forward.1
= control target key start
LH: loop header
LB: loop body
LE: loop exit
PB: predicated region body
PF: predicated region fallthrough
CT: control target
= control target key end

     0   :  { %s1720_s15 = smov 0   ;;  %s1722_s16 = smov 0   ;;  %s1905_s0 = inlined_call_operand.vmem [shape: f32[128,128], index: 0, kind: input, shape index: {}]   ;;  %s1906_s1 = inlined_call_operand.vmem [shape: bf16[128,128], index: 1, kind: input, shape index: {}]   ;;  %s1907_s2 = inlined_call_operand.vmem [shape: f32[3,128,128], index: 2, kind: input, shape index: {}]   ;;  %s1908_s3 = inlined_call_operand.vmem [shape: f32[3,1,128], index: 3, kind: input, shape index: {}]   ;;  %s1909_s4 = inlined_call_operand.vmem [shape: f32[128,128], index: 4, kind: output, shape index: {}]  }
   0x1   :  { %s1724_s17 = smov 0  }
   0x2 LB: > { %s29_s18 = sadd.s32 1, %s1689_s16  ;;  %p1321_p1 = scmp.lt.s32.totalorder %s1693_s17, 1  ;;  %s1693_s17 = sphi %s1724_s17, %s14_s17   ;;  %s1689_s16 = sphi %s1722_s16, %s1911_s16   ;;  %s1685_s15 = sphi %s1720_s15, %s1910_s15  }
   0x3   : > { %p31_p0 = scmp.ge.s32.totalorder %s29_s18, 3  ;;  %p163_p2 = scmp.lt.s32.totalorder (!%p1321_p1), %s1685_s15, 2 }
   0x4   : > { %130 = sbr.rel (%p1321_p1) target bundleno = 557 (0x22d), region = 32  ;;  %p172_p3 = scmp.eq.s32.totalorder (!%p1321_p1), %s1685_s15, 0 }
   0x5   : > { %s1913_s18 = smov (%p31_p0, %s29_s18), 0 }
   0x9   : > { %s1742_s19 = scalar_select %p163_p2, %s1685_s15, 2  ;;  %v214_v0 = vld [vmem:[%s1905_s0] sm:$0xff] (%p172_p3)  ;;  %v216_v1 = vld [vmem:[%s1905_s0 + $0x8] sm:$0xff] (%p172_p3)  ;;  %v218_v2 = vld [vmem:[%s1905_s0 + $0x10] sm:$0xff] (%p172_p3) }
   0xa   : > { %180 = sbr.rel (!%p172_p3) target bundleno = 21 (0x15), region = 36  ;;  %215 = vst [vmem:[#allocation2 + $0x30] sm:$0xff] (%p172_p3), %v214_v0  ;;  %217 = vst [vmem:[#allocation2] sm:$0xff] (%p172_p3), %v216_v1  ;;  %v220_v3 = vld [vmem:[%s1905_s0 + $0x18] sm:$0xff] (%p172_p3)  ;;  %v222_v4 = vld [vmem:[%s1905_s0 + $0x20] sm:$0xff] (%p172_p3) }
   0xb   : > { %s1409_s20 = sshll.u32 %s1742_s19, 7  ;;  %s170_s23 = scalar_lea.vmem %s1908_s3, %s1742_s19  ;;  %219 = vst [vmem:[#allocation2 + $0x58] sm:$0xff] (%p172_p3), %v218_v2  ;;  %v224_v5 = vld [vmem:[%s1905_s0 + $0x28] sm:$0xff] (%p172_p3)  ;;  %221 = vst [vmem:[#allocation2 + $0x18] sm:$0xff] (%p172_p3), %v220_v3  ;;  %v226_v6 = vld [vmem:[%s1905_s0 + $0x30] sm:$0xff] (%p172_p3) }
   0xc   : > { %s1752_s26 = scalar_lea.vmem %s1907_s2, %s1409_s20  ;;  %223 = vst [vmem:[#allocation2 + $0x50] sm:$0xff] (%p172_p3), %v222_v4  ;;  %225 = vst [vmem:[#allocation2 + $0x68] sm:$0xff] (%p172_p3), %v224_v5  ;;  %v228_v7 = vld [vmem:[%s1905_s0 + $0x38] sm:$0xff] (%p172_p3)  ;;  %v230_v8 = vld [vmem:[%s1905_s0 + $0x40] sm:$0xff] (%p172_p3) }
   0xd   : > { %227 = vst [vmem:[#allocation2 + $0x8] sm:$0xff] (%p172_p3), %v226_v6  ;;  %229 = vst [vmem:[#allocation2 + $0x48] sm:$0xff] (%p172_p3), %v228_v7  ;;  %v232_v9 = vld [vmem:[%s1905_s0 + $0x48] sm:$0xff] (%p172_p3)  ;;  %v234_v10 = vld [vmem:[%s1905_s0 + $0x50] sm:$0xff] (%p172_p3) }
   0xe   : > { %231 = vst [vmem:[#allocation2 + $0x40] sm:$0xff] (%p172_p3), %v230_v8  ;;  %v236_v11 = vld [vmem:[%s1905_s0 + $0x58] sm:$0xff] (%p172_p3)  ;;  %233 = vst [vmem:[#allocation2 + $0x20] sm:$0xff] (%p172_p3), %v232_v9  ;;  %v238_v12 = vld [vmem:[%s1905_s0 + $0x60] sm:$0xff] (%p172_p3) }
   0xf   : > { %235 = vst [vmem:[#allocation2 + $0x10] sm:$0xff] %v234_v10  ;;  %237 = vst [vmem:[#allocation2 + $0x38] sm:$0xff] %v236_v11  ;;  %v240_v13 = vld [vmem:[%s1905_s0 + $0x68] sm:$0xff]  ;;  %v242_v14 = vld [vmem:[%s1905_s0 + $0x70] sm:$0xff] }
  0x10   : > { %239 = vst [vmem:[#allocation2 + $0x60] sm:$0xff] %v238_v12  ;;  %241 = vst [vmem:[#allocation2 + $0x70] sm:$0xff] %v240_v13  ;;  %v244_v15 = vld [vmem:[%s1905_s0 + $0x78] sm:$0xff] }
  0x11   : > { %243 = vst [vmem:[#allocation2 + $0x78] sm:$0xff] %v242_v14  ;;  %245 = vst [vmem:[#allocation2 + $0x28] sm:$0xff] %v244_v15 }
  0x12   : > { %253 = vsyncadd [#allocation5], 2048 }
  0x13   : > { %1679 = dma.done.wait [#allocation5], 2048 }
  0x14   : > { %1680 = vsyncadd [#allocation5], 4294965248 }
  0x15 PF: > { %v294_v16 = vld [vmem:[%s1752_s26 + $0x78] sm:$0xff]  ;;  %v293_v17 = vld [vmem:[%s1752_s26 + $0x70] sm:$0xff]  ;;  %v292_v18 = vld [vmem:[%s1752_s26 + $0x68] sm:$0xff]  ;;  %p1407_p4 = scmp.ne.s32.totalorder %s1685_s15, 2 }
  0x16   : > { %1539 = vmatprep.subr.mxu0 %v294_v16  ;;  %v291_v19 = vld [vmem:[%s1752_s26 + $0x60] sm:$0xff]  ;;  %v290_v21 = vld [vmem:[%s1752_s26 + $0x58] sm:$0xff]  ;;  %v289_v22 = vld [vmem:[%s1752_s26 + $0x50] sm:$0xff] }
  0x17   : > { %1540 = vmatpush3.msra.mxu0 %v294_v16  ;;  %v263_v20 = vld [vmem:[#allocation2 + $0x30] sm:$0xff]  ;;  %v288_v23 = vld [vmem:[%s1752_s26 + $0x48] sm:$0xff]  ;;  %v287_v24 = vld [vmem:[%s1752_s26 + $0x40] sm:$0xff] }
  0x18   : > { %1541 = vmatprep.subr.mxu0 %v293_v17  ;;  %1571 = vmatprep.mubr.f32.mxu0 %v263_v20  ;;  %v286_v25 = vld [vmem:[%s1752_s26 + $0x38] sm:$0xff]  ;;  %v285_v26 = vld [vmem:[%s1752_s26 + $0x30] sm:$0xff]  ;;  %v284_v27 = vld [vmem:[%s1752_s26 + $0x28] sm:$0xff] }
  0x19   : > { %1542 = vmatpush3.msra.mxu0 %v293_v17  ;;  %v283_v28 = vld [vmem:[%s1752_s26 + $0x20] sm:$0xff]  ;;  %v282_v29 = vld [vmem:[%s1752_s26 + $0x18] sm:$0xff]  ;;  %v281_v30 = vld [vmem:[%s1752_s26 + $0x10] sm:$0xff] }
  0x1a   : > { %1543 = vmatprep.subr.mxu0 %v292_v18  ;;  %v280_v31 = vld [vmem:[%s1752_s26 + $0x8] sm:$0xff]  ;;  %v279_v32 = vld [vmem:[%s1752_s26] sm:$0xff]  ;;  %v265_v34 = vld [vmem:[#allocation2 + $0x58] sm:$0xff] }
  0x1b   : > { %1544 = vmatpush3.msra.mxu0 %v292_v18  ;;  %v264_v33 = vld [vmem:[#allocation2] sm:$0xff]  ;;  %v266_v35 = vld [vmem:[#allocation2 + $0x18] sm:$0xff]  ;;  %v267_v36 = vld [vmem:[#allocation2 + $0x50] sm:$0xff] }
  0x1c   : > { %1545 = vmatprep.subr.mxu0 %v291_v19  ;;  %v268_v37 = vld [vmem:[#allocation2 + $0x68] sm:$0xff]  ;;  %v271_v40 = vld [vmem:[#allocation2 + $0x40] sm:$0xff]  ;;  %v273_v42 = vld [vmem:[#allocation2 + $0x10] sm:$0xff] }
  0x1d   : > { %1546 = vmatpush3.msra.mxu0 %v291_v19  ;;  %v269_v38 = vld [vmem:[#allocation2 + $0x8] sm:$0xff]  ;;  %v272_v41 = vld [vmem:[#allocation2 + $0x20] sm:$0xff]  ;;  %v274_v43 = vld [vmem:[#allocation2 + $0x38] sm:$0xff] }
  0x1e   : > { %1547 = vmatprep.subr.mxu0 %v290_v21  ;;  %v270_v39 = vld [vmem:[#allocation2 + $0x48] sm:$0xff]  ;;  %v275_v44 = vld [vmem:[#allocation2 + $0x60] sm:$0xff]  ;;  %v276_v45 = vld [vmem:[#allocation2 + $0x70] sm:$0xff] }
  0x1f   : > { %1548 = vmatpush3.msra.mxu0 %v290_v21  ;;  %v277_v46 = vld [vmem:[#allocation2 + $0x78] sm:$0xff]  ;;  %v278_v47 = vld [vmem:[#allocation2 + $0x28] sm:$0xff]  ;;  %v1659_v48 = vld [vmem:[%s1906_s1] sm:$0xff]  }
  0x20   : > { %1549 = vmatprep.subr.mxu0 %v289_v22  ;;  %1611 = vmatprep.mubr.bf16.mxu1 %v1659_v48  ;;  %v1660_v17 = vld [vmem:[%s1906_s1 + $0x8] sm:$0xff]   ;;  %v1661_v18 = vld [vmem:[%s1906_s1 + $0x10] sm:$0xff]   ;;  %v1662_v19 = vld [vmem:[%s1906_s1 + $0x18] sm:$0xff]  }
  0x21   : > { %1550 = vmatpush3.msra.mxu0 %v289_v22  ;;  %v1663_v20 = vld [vmem:[%s1906_s1 + $0x20] sm:$0xff]   ;;  %v1664_v21 = vld [vmem:[%s1906_s1 + $0x28] sm:$0xff]   ;;  %v1665_v22 = vld [vmem:[%s1906_s1 + $0x30] sm:$0xff]  }
  0x22   : > { %1551 = vmatprep.subr.mxu0 %v288_v23 }
  0x23   : > { %1552 = vmatpush3.msra.mxu0 %v288_v23  ;;  %v1666_v23 = vld [vmem:[%s1906_s1 + $0x38] sm:$0xff]  }
  0x24   : > { %1553 = vmatprep.subr.mxu0 %v287_v24 }
  0x25   : > { %1554 = vmatpush3.msra.mxu0 %v287_v24  ;;  %v1406_v24 = vld [vmem:[%s170_s23] ss:$0 sm:$0xff] }
  0x26   : > { %1555 = vmatprep.subr.mxu0 %v286_v25 }
  0x27   : > { %1556 = vmatpush3.msra.mxu0 %v286_v25 }
  0x28   : > { %1557 = vmatprep.subr.mxu0 %v285_v26 }
  0x29   : > { %1558 = vmatpush3.msra.mxu0 %v285_v26 }
  0x2a   : > { %1559 = vmatprep.subr.mxu0 %v284_v27 }
  0x2b   : > { %1560 = vmatpush3.msra.mxu0 %v284_v27 }
  0x2c   : > { %1561 = vmatprep.subr.mxu0 %v283_v28 }
  0x2d   : > { %1562 = vmatpush3.msra.mxu0 %v283_v28 }
  0x2e   : > { %1563 = vmatprep.subr.mxu0 %v282_v29 }
  0x2f   : > { %1564 = vmatpush3.msra.mxu0 %v282_v29 }
  0x30   : > { %1565 = vmatprep.subr.mxu0 %v281_v30 }
  0x31   : > { %1566 = vmatpush3.msra.mxu0 %v281_v30 }
  0x32   : > { %1567 = vmatprep.subr.mxu0 %v280_v31 }
  0x33   : > { %1568 = vmatpush3.msra.mxu0 %v280_v31 }
  0x34   : > { %1569 = vmatprep.subr.mxu0 %v279_v32 }
  0x35   : > { %1570 = vmatpush3.msra.mxu0 %v279_v32 }
  0x36   : > { %1572 = vmatmul.mubr.f32.vlgmr.msra.gmra.mxu0 %v264_v33 }
  0x37   : > { %1574 = vmatprep.mubr.f32.mxu0 %v265_v34 }
  0x3a   : > { %1575 = vmatmul.mubr.f32.gmra.mxu0 %v266_v35 }
  0x3b   : > { %1577 = vmatprep.mubr.f32.mxu0 %v267_v36 }
  0x3e   : > { %1578 = vmatmul.mubr.f32.gmra.mxu0 %v268_v37 }
  0x3f   : > { %1580 = vmatprep.mubr.f32.mxu0 %v269_v38 }
  0x42   : > { %1581 = vmatmul.mubr.f32.gmra.mxu0 %v270_v39 }
  0x43   : > { %1583 = vmatprep.mubr.f32.mxu0 %v271_v40 }
  0x46   : > { %1584 = vmatmul.mubr.f32.gmra.mxu0 %v272_v41 }
  0x47   : > { %1586 = vmatprep.mubr.f32.mxu0 %v273_v42 }
  0x4a   : > { %1587 = vmatmul.mubr.f32.gmra.mxu0 %v274_v43 }
  0x4b   : > { %1589 = vmatprep.mubr.f32.mxu0 %v275_v44 }
  0x4e   : > { %1590 = vmatmul.mubr.f32.gmra.mxu0 %v276_v45 }
  0x4f   : > { %1592 = vmatprep.mubr.f32.mxu0 %v277_v46 }
  0x52   : > { %1593 = vmatmul.mubr.f32.gmra.mxu0 %v278_v47 }
  0xf6   : > { %v1573_v49 = vpop.f32.mrf.mxu0 }
  0xf8   : > { %v361_v50 = vpop.f32.mrf.mxu0 }
  0xf9   : > { %v1447_v51 = vpack.c.bf16 %v1573_v49, %v361_v50 }
  0xfa   : > { %v1576_v52 = vpop.f32.mrf.mxu0 }
  0xfb   : > { %1448 = vst [vmem:[#allocation3] sm:$0xff] %v1447_v51  }
  0xfc   : > { %v371_v53 = vpop.f32.mrf.mxu0 }
  0xfd   : > { %v1452_v54 = vpack.c.bf16 %v1576_v52, %v371_v53 }
  0xfe   : > { %v1579_v55 = vpop.f32.mrf.mxu0 }
  0xff   : > { %1484 = vst [vmem:[#allocation3 + $0x8] sm:$0xff] %v1452_v54  }
 0x100   : > { %v381_v56 = vpop.f32.mrf.mxu0 }
 0x101   : > { %v1457_v57 = vpack.c.bf16 %v1579_v55, %v381_v56 }
 0x102   : > { %v1582_v58 = vpop.f32.mrf.mxu0  ;;  %v1658_v16 = vld [vmem:[#allocation3] sm:$0xff]  }
 0x103   : > { %1485 = vst [vmem:[#allocation3 + $0x10] sm:$0xff] %v1457_v57  }
 0x104   : > { %v391_v59 = vpop.f32.mrf.mxu0 }
 0x105   : > { %v1462_v60 = vpack.c.bf16 %v1582_v58, %v391_v59 }
 0x106   : > { %v1585_v61 = vpop.f32.mrf.mxu0  ;;  %v1657_v15 = vld [vmem:[#allocation3 + $0x8] sm:$0xff]  }
 0x107   : > { %1486 = vst [vmem:[#allocation3 + $0x18] sm:$0xff] %v1462_v60  }
 0x108   : > { %v401_v62 = vpop.f32.mrf.mxu0 }
 0x109   : > { %v1467_v63 = vpack.c.bf16 %v1585_v61, %v401_v62 }
 0x10a   : > { %v1588_v0 = vpop.f32.mrf.mxu0  ;;  %v1656_v14 = vld [vmem:[#allocation3 + $0x10] sm:$0xff]  }
 0x10b   : > { %1487 = vst [vmem:[#allocation3 + $0x20] sm:$0xff] %v1467_v63  }
 0x10c   : > { %v411_v1 = vpop.f32.mrf.mxu0 }
 0x10d   : > { %v1472_v2 = vpack.c.bf16 %v1588_v0, %v411_v1 }
 0x10e   : > { %v1591_v3 = vpop.f32.mrf.mxu0  ;;  %v1655_v13 = vld [vmem:[#allocation3 + $0x18] sm:$0xff]  }
 0x10f   : > { %1488 = vst [vmem:[#allocation3 + $0x28] sm:$0xff] %v1472_v2  }
 0x110   : > { %v421_v4 = vpop.f32.mrf.mxu0 }
 0x111   : > { %v1477_v5 = vpack.c.bf16 %v1591_v3, %v421_v4 }
 0x112   : > { %v1594_v6 = vpop.f32.mrf.mxu0  ;;  %v1654_v12 = vld [vmem:[#allocation3 + $0x20] sm:$0xff]  }
 0x113   : > { %1489 = vst [vmem:[#allocation3 + $0x30] sm:$0xff] %v1477_v5  }
 0x114   : > { %v431_v7 = vpop.f32.mrf.mxu0 }
 0x115   : > { %v1482_v8 = vpack.c.bf16 %v1594_v6, %v431_v7 }
 0x116   : > { %v1653_v11 = vld [vmem:[#allocation3 + $0x28] sm:$0xff]  }
 0x117   : > { %1490 = vst [vmem:[#allocation3 + $0x38] sm:$0xff] %v1482_v8  }
 0x11a   : > { %v1652_v10 = vld [vmem:[#allocation3 + $0x30] sm:$0xff]  }
 0x11e   : > { %v1651_v9 = vld [vmem:[#allocation3 + $0x38] sm:$0xff]  }
 0x11f   : > { %1595 = vmatprep.subr.bf16.mxu1 %v1651_v9 }
 0x120   : > { %1596 = vmatpush3.bf16.msra.mxu1 %v1651_v9 }
 0x121   : > { %1597 = vmatprep.subr.bf16.mxu1 %v1652_v10 }
 0x124   : > { %1598 = vmatpush3.bf16.msra.mxu1 %v1652_v10 }
 0x125   : > { %1599 = vmatprep.subr.bf16.mxu1 %v1653_v11 }
 0x128   : > { %1600 = vmatpush3.bf16.msra.mxu1 %v1653_v11 }
 0x129   : > { %1601 = vmatprep.subr.bf16.mxu1 %v1654_v12 }
 0x12c   : > { %1602 = vmatpush3.bf16.msra.mxu1 %v1654_v12 }
 0x12d   : > { %1603 = vmatprep.subr.bf16.mxu1 %v1655_v13 }
 0x130   : > { %1604 = vmatpush3.bf16.msra.mxu1 %v1655_v13 }
 0x131   : > { %1605 = vmatprep.subr.bf16.mxu1 %v1656_v14 }
 0x134   : > { %1606 = vmatpush3.bf16.msra.mxu1 %v1656_v14 }
 0x135   : > { %1607 = vmatprep.subr.bf16.mxu1 %v1657_v15 }
 0x138   : > { %1608 = vmatpush3.bf16.msra.mxu1 %v1657_v15 }
 0x139   : > { %1609 = vmatprep.subr.bf16.mxu1 %v1658_v16 }
 0x13c   : > { %1610 = vmatpush3.bf16.msra.mxu1 %v1658_v16 }
 0x13f   : > { %1612 = vmatmul.mubr.bf16.vlgmr.msra.gmra.mxu1 %v1660_v17 }
 0x140   : > { %1615 = vmatprep.mubr.bf16.mxu1 %v1661_v18 }
 0x147   : > { %1616 = vmatmul.mubr.bf16.gmra.mxu1 %v1662_v19 }
 0x148   : > { %1619 = vmatprep.mubr.bf16.mxu1 %v1663_v20 }
 0x14f   : > { %1620 = vmatmul.mubr.bf16.gmra.mxu1 %v1664_v21 }
 0x150   : > { %1623 = vmatprep.mubr.bf16.mxu1 %v1665_v22 }
 0x157   : > { %1624 = vmatmul.mubr.bf16.gmra.mxu1 %v1666_v23 }
 0x1ff   : > { %v1613_v25 = vpop.f32.mrf.mxu1 }
 0x200   : > { %v1114_v26 = vadd.f32 %v1613_v25, %v1406_v24 }
 0x201   : > { %v990_v27 = vpop.f32.mrf.mxu1 }
 0x202   : > { %1131 = vst [vmem:[#allocation2 + $0x58] sm:$0xff] %v1114_v26  ;;  %v1112_v28 = vadd.f32 %v1406_v24, %v990_v27 }
 0x203   : > { %v1614_v29 = vpop.f32.mrf.mxu1 }
 0x204   : > { %1129 = vst [vmem:[#allocation2 + $0x30] sm:$0xff] %v1112_v28  ;;  %v1115_v30 = vadd.f32 %v1614_v29, %v1406_v24 }
 0x205   : > { %v993_v31 = vpop.f32.mrf.mxu1 }
 0x206   : > { %1132 = vst [vmem:[#allocation2 + $0x18] sm:$0xff] %v1115_v30  ;;  %v1113_v32 = vadd.f32 %v1406_v24, %v993_v31 }
 0x207   : > { %v1617_v33 = vpop.f32.mrf.mxu1 }
 0x208   : > { %1130 = vst [vmem:[#allocation2] sm:$0xff] %v1113_v32  ;;  %v1118_v34 = vadd.f32 %v1617_v33, %v1406_v24 }
 0x209   : > { %v1006_v35 = vpop.f32.mrf.mxu1 }
 0x20a   : > { %1135 = vst [vmem:[#allocation2 + $0x8] sm:$0xff] %v1118_v34  ;;  %v1116_v36 = vadd.f32 %v1406_v24, %v1006_v35 }
 0x20b   : > { %v1618_v37 = vpop.f32.mrf.mxu1 }
 0x20c   : > { %1133 = vst [vmem:[#allocation2 + $0x50] sm:$0xff] %v1116_v36  ;;  %v1119_v38 = vadd.f32 %v1618_v37, %v1406_v24 }
 0x20d   : > { %v1009_v39 = vpop.f32.mrf.mxu1 }
 0x20e   : > { %1136 = vst [vmem:[#allocation2 + $0x48] sm:$0xff] %v1119_v38  ;;  %v1117_v40 = vadd.f32 %v1406_v24, %v1009_v39 }
 0x20f   : > { %v1621_v41 = vpop.f32.mrf.mxu1 }
 0x210   : > { %1134 = vst [vmem:[#allocation2 + $0x68] sm:$0xff] %v1117_v40  ;;  %v1122_v42 = vadd.f32 %v1621_v41, %v1406_v24 }
 0x211   : > { %v1022_v43 = vpop.f32.mrf.mxu1 }
 0x212   : > { %1139 = vst [vmem:[#allocation2 + $0x10] sm:$0xff] %v1122_v42  ;;  %v1120_v44 = vadd.f32 %v1406_v24, %v1022_v43 }
 0x213   : > { %v1622_v45 = vpop.f32.mrf.mxu1 }
 0x214   : > { %1137 = vst [vmem:[#allocation2 + $0x40] sm:$0xff] %v1120_v44  ;;  %v1123_v46 = vadd.f32 %v1622_v45, %v1406_v24 }
 0x215   : > { %v1025_v47 = vpop.f32.mrf.mxu1 }
 0x216   : > { %1140 = vst [vmem:[#allocation2 + $0x38] sm:$0xff] %v1123_v46  ;;  %v1121_v48 = vadd.f32 %v1406_v24, %v1025_v47 }
 0x217   : > { %v1625_v49 = vpop.f32.mrf.mxu1 }
 0x218   : > { %1138 = vst [vmem:[#allocation2 + $0x20] sm:$0xff] %v1121_v48  ;;  %v1126_v50 = vadd.f32 %v1625_v49, %v1406_v24 }
 0x219   : > { %v1038_v51 = vpop.f32.mrf.mxu1 }
 0x21a   : > { %1143 = vst [vmem:[#allocation2 + $0x78] sm:$0xff] %v1126_v50  ;;  %v1124_v52 = vadd.f32 %v1406_v24, %v1038_v51 }
 0x21b   : > { %v1626_v53 = vpop.f32.mrf.mxu1 }
 0x21c   : > { %1141 = vst [vmem:[#allocation2 + $0x60] sm:$0xff] %v1124_v52  ;;  %v1127_v54 = vadd.f32 %v1626_v53, %v1406_v24  ;;  %1148 = sbr.rel (%p1407_p4) target bundleno = 557 (0x22d), region = 94 }
 0x21d   : > { %v1041_v55 = vpop.f32.mrf.mxu1 }
 0x21e   : > { %1144 = vst [vmem:[#allocation2 + $0x28] sm:$0xff] %v1127_v54  ;;  %v1125_v56 = vadd.f32 %v1406_v24, %v1041_v55 }
 0x220   : > { %1142 = vst [vmem:[#allocation2 + $0x70] sm:$0xff] %v1125_v56 }
 0x221   : > { %v1183_v57 = vld [vmem:[#allocation2 + $0x30] sm:$0xff]  ;;  %v1185_v58 = vld [vmem:[#allocation2] sm:$0xff]  ;;  %v1187_v59 = vld [vmem:[#allocation2 + $0x58] sm:$0xff] }
 0x222   : > { %1184 = vst [vmem:[%s1909_s4] sm:$0xff] %v1183_v57  ;;  %1186 = vst [vmem:[%s1909_s4 + $0x8] sm:$0xff] %v1185_v58  ;;  %v1189_v60 = vld [vmem:[#allocation2 + $0x18] sm:$0xff]  ;;  %v1191_v61 = vld [vmem:[#allocation2 + $0x50] sm:$0xff] }
 0x223   : > { %1188 = vst [vmem:[%s1909_s4 + $0x10] sm:$0xff] %v1187_v59  ;;  %v1193_v62 = vld [vmem:[#allocation2 + $0x68] sm:$0xff]  ;;  %1190 = vst [vmem:[%s1909_s4 + $0x18] sm:$0xff] %v1189_v60  ;;  %v1199_v1 = vld [vmem:[#allocation2 + $0x40] sm:$0xff] }
 0x224   : > { %1192 = vst [vmem:[%s1909_s4 + $0x20] sm:$0xff] %v1191_v61  ;;  %1194 = vst [vmem:[%s1909_s4 + $0x28] sm:$0xff] %v1193_v62  ;;  %v1195_v63 = vld [vmem:[#allocation2 + $0x8] sm:$0xff]  ;;  %v1201_v2 = vld [vmem:[#allocation2 + $0x20] sm:$0xff] }
 0x225   : > { %v1197_v0 = vld [vmem:[#allocation2 + $0x48] sm:$0xff]  ;;  %1196 = vst [vmem:[%s1909_s4 + $0x30] sm:$0xff] %v1195_v63  ;;  %1200 = vst [vmem:[%s1909_s4 + $0x40] sm:$0xff] %v1199_v1  ;;  %v1203_v3 = vld [vmem:[#allocation2 + $0x10] sm:$0xff] }
 0x226   : > { %1198 = vst [vmem:[%s1909_s4 + $0x38] sm:$0xff] %v1197_v0  ;;  %v1205_v4 = vld [vmem:[#allocation2 + $0x38] sm:$0xff]  ;;  %1202 = vst [vmem:[%s1909_s4 + $0x48] sm:$0xff] %v1201_v2  ;;  %v1207_v5 = vld [vmem:[#allocation2 + $0x60] sm:$0xff] }
 0x227   : > { %1204 = vst [vmem:[%s1909_s4 + $0x50] sm:$0xff] %v1203_v3  ;;  %1206 = vst [vmem:[%s1909_s4 + $0x58] sm:$0xff] %v1205_v4  ;;  %v1209_v6 = vld [vmem:[#allocation2 + $0x70] sm:$0xff]  ;;  %v1211_v7 = vld [vmem:[#allocation2 + $0x78] sm:$0xff] }
 0x228   : > { %1208 = vst [vmem:[%s1909_s4 + $0x60] sm:$0xff] %v1207_v5  ;;  %1210 = vst [vmem:[%s1909_s4 + $0x68] sm:$0xff] %v1209_v6  ;;  %v1213_v8 = vld [vmem:[#allocation2 + $0x28] sm:$0xff] }
 0x229   : > { %1212 = vst [vmem:[%s1909_s4 + $0x70] sm:$0xff] %v1211_v7  ;;  %1214 = vst [vmem:[%s1909_s4 + $0x78] sm:$0xff] %v1213_v8 }
 0x22a   : > { %1222 = vsyncadd [#allocation5], 2048 }
 0x22b   : > { %1681 = dma.done.wait [#allocation5], 2048 }
 0x22c   : > { %1682 = vsyncadd [#allocation5], 4294965248 }
 0x22d PF: > { %s14_s17 = sadd.s32 1, %s1693_s17   ;;  %s1910_s15 = smov %s1689_s16 }
 0x22e   : > { %p11_p5 = scmp.ge.s32.totalorder %s14_s17, 4   ;;  %s1911_s16 = smov %s1913_s18 }
 0x230   :  { %13 = sbr.rel (!%p11_p5) target bundleno = 2 (0x2), region = 169 }
 0x235   :  { %1226 = vsyncmov [#allocation5] }
 0x238   :  { %s1227_s22 = vpop.sfrf %1226 }
 0x239   :  { %p1408_p6 = scmp.ne.s32.totalorder %s1227_s22, 0 }
 0x23b   :  { %1231 = shalt.err (%p1408_p6)  }

</bundles_post_ra>
